<compile_context>
chip_gen: v6e
topology: v6e:2x2x1
jax: 0.10.0
libtpu: 0.0.40
codegen_flags: <defaults>
</compile_context>

<pallas_src>
import jax
import jax.numpy as jnp
from jax.experimental import pallas as pl
from jax.experimental.pallas import tpu as pltpu

_LANE = 128        # lane width (last dim of padded feature axes)
_SUBLANE = 16      # sublane multiple safe for both f32 (8) and bf16 (16)
_MAX_B_TILE = 512  # upper cap on batch rows per grid step


def _round_up(x, m):
    return (x + m - 1) // m * m


def _choose_batch_tile(B):
    """Pick rows-per-grid-step.

    Tiny batches: one minimal sublane-padded step.  Otherwise aim for >= 2 grid
    steps (so dimension_semantics=("parallel",) lets v7x's two TensorCores both
    work) with a cap that amortizes per-step overhead while keeping activation
    tiles small next to the resident weights.
    """
    if B <= 2 * _SUBLANE:
        return _round_up(max(B, 1), _SUBLANE)
    half = _round_up((B + 1) // 2, _SUBLANE)
    return int(min(half, _MAX_B_TILE))


def _vmem_capacity_bytes():
    """Per-core VMEM capacity; conservative v7x value if the query fails."""
    try:
        return int(pltpu.get_tpu_info().vmem_capacity_bytes)
    except Exception:
        return 64 * 1024 * 1024


def _derive_vmem_limit(B_tile, F, C_p, prepped_params):
    """Size the VMEM budget from actual buffer usage instead of a flat guess."""
    wb_bytes = sum(int(w.size) * w.dtype.itemsize + int(b.size) * b.dtype.itemsize
                   for w, b in prepped_params)
    x_tile_bytes = B_tile * F * 4 * 2          # double-buffered f32 input tile
    out_tile_bytes = B_tile * C_p * 4 * 2      # double-buffered f32 output tile
    widths = [int(w.shape[1]) for w, _ in prepped_params] + [F]
    act_bytes = B_tile * max(widths) * 4 * 4   # live h/z/temps, generous
    # weights x2 keeps the limit valid even on the double-buffered fallback path
    need = wb_bytes * 2 + x_tile_bytes + out_tile_bytes + act_bytes
    limit = int(need * 1.25) + (4 << 20)       # slack for Mosaic internal scratch
    limit = max(limit, 32 << 20)
    cap = _vmem_capacity_bytes()
    return int(min(limit, int(cap * 0.8)))


# ----------------------------- kernel --------------------------------------- #

def _make_fused_mlp_kernel(num_layers):
    """kernel(x_ref, w0, b0, ..., wL, bL, o_ref) for a fixed layer count.

    Activations stay resident across all layers; only the final log_softmax
    tile is stored, lane-dense at a 128-lane multiple.
    """

    def kernel(*refs):
        x_ref = refs[0]
        o_ref = refs[-1]
        wb_refs = refs[1:-1]

        # Cast to bf16 in-kernel (VPU slack) instead of materializing a padded
        # bf16 copy of the activations in HBM.
        h = x_ref[...].astype(jnp.bfloat16)                 # (B_tile, F)
        for layer in range(num_layers):
            w_ref = wb_refs[2 * layer]
            b_ref = wb_refs[2 * layer + 1]
            # bf16 x bf16 matmul, f32 accumulation on the MXU.
            z = jnp.dot(h, w_ref[...], preferred_element_type=jnp.float32)
            z = z + b_ref[...]                              # f32 epilogue
            if layer < num_layers - 1:
                h = jnp.maximum(z, 0.0).astype(jnp.bfloat16)
            else:
                # log_softmax along the lane axis.  Padded class lanes carry a
                # -1e30 bias so exp() underflows to 0 and they drop out of the
                # row max / log-sum-exp.
                m = jnp.max(z, axis=1, keepdims=True)       # XLU cross-lane reduce
                shifted = z - m
                lse = jnp.log(jnp.sum(jnp.exp(shifted), axis=1, keepdims=True))
                o_ref[...] = (shifted - lse).astype(o_ref.dtype)

    return kernel


# ----------------------------- params --------------------------------------- #

def init_mlp_params(key, layers, num_class):
    """PyTorch-style params mirroring MLPNet.__init__.

    Hidden linears: weight ~ N(0, 0.01), bias = 0 (as in weight_init).
    Final linear  : weight ~ U(-1/sqrt(fan_in), 1/sqrt(fan_in)), bias = 0.
    Stored PyTorch-style as (out, in), f32.
    """
    params = []
    num = len(layers)
    for i in range(num - 1):
        key, wk = jax.random.split(key)
        w = 0.01 * jax.random.normal(wk, (layers[i + 1], layers[i]), jnp.float32)
        b = jnp.zeros((layers[i + 1],), jnp.float32)
        params.append((w, b))
    key, wk = jax.random.split(key)
    fan_in = layers[num - 1]
    bound = 1.0 / (fan_in ** 0.5)
    w = jax.random.uniform(wk, (num_class, fan_in), jnp.float32, -bound, bound)
    b = jnp.zeros((num_class,), jnp.float32)
    params.append((w, b))
    return params


def prepare_params(params):
    """One-time kernel prep.

    Transpose to (F_in, F_out), zero-pad output-feature dims to 128 lanes,
    cast weights to bf16, and fill the padded class lanes of the FINAL bias
    with -1e30 (masks them out of log_softmax; biases stay f32 on purpose).
    The FIRST layer keeps K = in_features unpadded so the flattened input can
    be fed to the kernel without a host-side feature pad.
    """
    prepped = []
    n = len(params)
    for idx, (w, b) in enumerate(params):
        f_out, f_in = w.shape
        f_in_p = f_in if idx == 0 else _round_up(f_in, _LANE)
        f_out_p = _round_up(f_out, _LANE)
        w_t = jnp.zeros((f_in_p, f_out_p), jnp.float32).at[:f_in, :f_out].set(w.T)
        pad_fill = -1e30 if idx == n - 1 else 0.0
        b_p = jnp.full((1, f_out_p), pad_fill, jnp.float32).at[0, :f_out].set(b)
        prepped.append((w_t.astype(jnp.bfloat16), b_p))
    return prepped


# ----------------------------- forward -------------------------------------- #

def mlpnet_forward(prepped_params, x, num_class):
    """Forward pass of MLPNet. x is NCHW (B, C, H, W)."""
    B = x.shape[0]
    x2 = x.reshape(B, -1).astype(jnp.float32)          # x.view(x.shape[0], -1)
    F = x2.shape[1]
    assert F == prepped_params[0][0].shape[0], "input features mismatch"
    C_p = prepped_params[-1][0].shape[1]               # padded num_class

    B_tile = _choose_batch_tile(B)
    grid_steps = -(-B // B_tile)                       # cdiv
    B_p = grid_steps * B_tile
    if B_p != B:
        # Cheap f32 row pad so every grid block is fully in-bounds; skipped
        # entirely when the batch divides the tile (the production case).
        x2 = jnp.zeros((B_p, F), jnp.float32).at[:B].set(x2)

    num_layers = len(prepped_params)
    kernel = _make_fused_mlp_kernel(num_layers)

    flat_wb = []
    wb_shapes = []
    for (w_p, b_p) in prepped_params:
        flat_wb.extend([w_p, b_p])
        wb_shapes.extend([w_p.shape, b_p.shape])

    # Advisory cost estimate so XLA schedules surrounding ops correctly.
    flops = 2 * B_p * sum(int(w.shape[0]) * int(w.shape[1]) for w, _ in prepped_params)
    bytes_accessed = (int(x2.size) * 4 + B_p * C_p * 4
                      + sum(int(a.size) * a.dtype.itemsize for a in flat_wb))
    cost = pl.CostEstimate(flops=int(flops),
                           transcendentals=int(B_p * (C_p + 1)),
                           bytes_accessed=int(bytes_accessed))

    vmem_limit = _derive_vmem_limit(B_tile, F, C_p, prepped_params)

    def build(single_buffer_weights):
        in_specs = [pl.BlockSpec((B_tile, F), lambda i: (i, 0))]
        for shape in wb_shapes:
            if single_buffer_weights:
                # Grid-invariant operand: single buffer halves weight VMEM.
                spec = pl.BlockSpec(shape, lambda i: (0, 0),
                                    pipeline_mode=pl.Buffered(1))
            else:
                spec = pl.BlockSpec(shape, lambda i: (0, 0))
            in_specs.append(spec)
        return pl.pallas_call(
            kernel,
            out_shape=jax.ShapeDtypeStruct((B_p, C_p), jnp.float32),
            grid_spec=pltpu.PrefetchScalarGridSpec(
                num_scalar_prefetch=0,
                grid=(grid_steps,),
                in_specs=in_specs,
                out_specs=pl.BlockSpec((B_tile, C_p), lambda i: (i, 0)),
            ),
            compiler_params=pltpu.CompilerParams(
                dimension_semantics=("parallel",),   # v7x: batch tiles over 2 TCs
                vmem_limit_bytes=vmem_limit,
            ),
            cost_estimate=cost,
        )

    try:
        out_padded = build(single_buffer_weights=True)(x2, *flat_wb)
    except Exception:
        # Older JAX builds may not support pipeline_mode on BlockSpec; the
        # default (double-buffered) path is still correct, just uses more VMEM.
        out_padded = build(single_buffer_weights=False)(x2, *flat_wb)

    return out_padded[:B, :num_class]


# pure-JAX reference (for correctness check only)
def _reference_forward(raw_params, x):
    h = x.reshape(x.shape[0], -1).astype(jnp.float32)
    for (w, b) in raw_params[:-1]:
        h = jnp.maximum(h @ w.T + b, 0.0)
    w, b = raw_params[-1]
    return jax.nn.log_softmax(h @ w.T + b, axis=1)


# ----------------------------- main ----------------------------------------- #

if __name__ == "__main__":
    key = jax.random.PRNGKey(0)

    # Small shapes consistent with the module: batch=2, input image (1, 8, 8)
    # -> 64 flattened features; layers = [64, 32], num_class = 10.
    layers = [64, 32]
    num_class = 10
    B, C, H, W = 2, 1, 8, 8
    assert C * H * W == layers[0]

    key, pk, xk = jax.random.split(key, 3)
    raw_params = init_mlp_params(pk, layers, num_class)
    params = prepare_params(raw_params)          # one-time transpose/pad/bf16 cast
    x = jax.random.normal(xk, (B, C, H, W), jnp.float32)

    out = mlpnet_forward(params, x, num_class)
    out = jax.block_until_ready(out)

    # sanity 1: shape and log_softmax rows exp-sum to 1
    row_sums = jnp.exp(out).sum(axis=1)
    assert out.shape == (B, num_class)
    assert bool(jnp.all(jnp.abs(row_sums - 1.0) < 1e-3))

    # sanity 2: matches the pure-JAX f32 reference (bf16 matmul tolerance)
    ref = _reference_forward(raw_params, x)
    assert bool(jnp.all(jnp.abs(out - ref) < 2e-2))

    print("KERNEL_OK")
</pallas_src>

<mosaic_0001>
module attributes {stable_mosaic.version = 11 : i64} {
  func.func @kernel(%arg0: i32, %arg1: memref<16x64xf32, #tpu.memory_space<vmem>>, %arg2: memref<64x128xbf16, #tpu.memory_space<vmem>>, %arg3: memref<1x128xf32, #tpu.memory_space<vmem>>, %arg4: memref<128x128xbf16, #tpu.memory_space<vmem>>, %arg5: memref<1x128xf32, #tpu.memory_space<vmem>>, %arg6: memref<16x128xf32, #tpu.memory_space<vmem>>) attributes {dimension_semantics = [#tpu.dimension_semantics<parallel>], iteration_bounds = array<i64: 1>, scalar_prefetch = 0 : i64, scratch_operands = 0 : i64, tpu.core_type = #tpu.core_type<tc>, window_params = [{transform_indices = @transform_0, window_bounds = array<i64: 16, 64>}, {pipeline_mode = #tpu.pipeline_mode<synchronous>, transform_indices = @transform_1, window_bounds = array<i64: 64, 128>}, {pipeline_mode = #tpu.pipeline_mode<synchronous>, transform_indices = @transform_2, window_bounds = array<i64: 1, 128>}, {pipeline_mode = #tpu.pipeline_mode<synchronous>, transform_indices = @transform_3, window_bounds = array<i64: 128, 128>}, {pipeline_mode = #tpu.pipeline_mode<synchronous>, transform_indices = @transform_4, window_bounds = array<i64: 1, 128>}, {transform_indices = @transform_5, window_bounds = array<i64: 16, 128>}]} {
    %c0 = arith.constant 0 : index
    %c0_0 = arith.constant 0 : index
    %0 = vector.load %arg1[%c0, %c0_0] : memref<16x64xf32, #tpu.memory_space<vmem>>, vector<16x64xf32>
    %1 = arith.truncf %0 : vector<16x64xf32> to vector<16x64xbf16>
    %c0_1 = arith.constant 0 : index
    %c0_2 = arith.constant 0 : index
    %2 = vector.load %arg2[%c0_1, %c0_2] : memref<64x128xbf16, #tpu.memory_space<vmem>>, vector<64x128xbf16>
    %cst = arith.constant dense<0.000000e+00> : vector<16x128xf32>
    %3 = tpu.matmul %1, %2, %cst {dimension_numbers = #tpu.dot_dimension_numbers<[1], [0], [0], [1], [0, 0, 1, 1], [], []>} : vector<16x64xbf16>, vector<64x128xbf16>, vector<16x128xf32> -> vector<16x128xf32>
    %c0_3 = arith.constant 0 : index
    %c0_4 = arith.constant 0 : index
    %4 = vector.load %arg3[%c0_3, %c0_4] : memref<1x128xf32, #tpu.memory_space<vmem>>, vector<1x128xf32>
    %5 = vector.broadcast %4 : vector<1x128xf32> to vector<16x128xf32>
    %6 = arith.addf %3, %5 : vector<16x128xf32>
    %cst_5 = arith.constant 0.000000e+00 : f32
    %7 = vector.broadcast %cst_5 : f32 to vector<16x128xf32>
    %8 = arith.maximumf %6, %7 : vector<16x128xf32>
    %9 = arith.truncf %8 : vector<16x128xf32> to vector<16x128xbf16>
    %c0_6 = arith.constant 0 : index
    %c0_7 = arith.constant 0 : index
    %10 = vector.load %arg4[%c0_6, %c0_7] : memref<128x128xbf16, #tpu.memory_space<vmem>>, vector<128x128xbf16>
    %cst_8 = arith.constant dense<0.000000e+00> : vector<16x128xf32>
    %11 = tpu.matmul %9, %10, %cst_8 {dimension_numbers = #tpu.dot_dimension_numbers<[1], [0], [0], [1], [0, 0, 1, 1], [], []>} : vector<16x128xbf16>, vector<128x128xbf16>, vector<16x128xf32> -> vector<16x128xf32>
    %c0_9 = arith.constant 0 : index
    %c0_10 = arith.constant 0 : index
    %12 = vector.load %arg5[%c0_9, %c0_10] : memref<1x128xf32, #tpu.memory_space<vmem>>, vector<1x128xf32>
    %13 = vector.broadcast %12 : vector<1x128xf32> to vector<16x128xf32>
    %14 = arith.addf %11, %13 : vector<16x128xf32>
    %cst_11 = arith.constant dense<0xFF800000> : vector<16xf32>
    %15 = vector.multi_reduction <maximumf>, %14, %cst_11 [1] : vector<16x128xf32> to vector<16xf32>
    %16 = vector.shape_cast %15 : vector<16xf32> to vector<16x1xf32>
    %17 = vector.broadcast %16 : vector<16x1xf32> to vector<16x128xf32>
    %18 = arith.subf %14, %17 : vector<16x128xf32>
    %19 = math.exp %18 : vector<16x128xf32>
    %cst_12 = arith.constant dense<0.000000e+00> : vector<16xf32>
    %20 = vector.multi_reduction <add>, %19, %cst_12 [1] : vector<16x128xf32> to vector<16xf32>
    %21 = vector.shape_cast %20 : vector<16xf32> to vector<16x1xf32>
    %22 = math.log %21 : vector<16x1xf32>
    %23 = vector.broadcast %22 : vector<16x1xf32> to vector<16x128xf32>
    %24 = arith.subf %18, %23 : vector<16x128xf32>
    %c0_13 = arith.constant 0 : index
    %c0_14 = arith.constant 0 : index
    %25 = vector.load %arg6[%c0_13, %c0_14] : memref<16x128xf32, #tpu.memory_space<vmem>>, vector<16x128xf32>
    tpu.vector_store %arg6[%c0_13, %c0_14], %24 {strides = array<i32>} : memref<16x128xf32, #tpu.memory_space<vmem>>, vector<16x128xf32>,
    return
  }
  func.func @transform_0(%arg0: i32) -> (i32, i32) {
    %c0_i32 = arith.constant 0 : i32
    %c0_i32_0 = arith.constant 0 : i32
    return %arg0, %c0_i32 : i32, i32
  }
  func.func @transform_1(%arg0: i32) -> (i32, i32) {
    %c0_i32 = arith.constant 0 : i32
    %c0_i32_0 = arith.constant 0 : i32
    %c0_i32_1 = arith.constant 0 : i32
    return %c0_i32, %c0_i32_0 : i32, i32
  }
  func.func @transform_2(%arg0: i32) -> (i32, i32) {
    %c0_i32 = arith.constant 0 : i32
    %c0_i32_0 = arith.constant 0 : i32
    %c0_i32_1 = arith.constant 0 : i32
    return %c0_i32, %c0_i32_0 : i32, i32
  }
  func.func @transform_3(%arg0: i32) -> (i32, i32) {
    %c0_i32 = arith.constant 0 : i32
    %c0_i32_0 = arith.constant 0 : i32
    %c0_i32_1 = arith.constant 0 : i32
    return %c0_i32, %c0_i32_0 : i32, i32
  }
  func.func @transform_4(%arg0: i32) -> (i32, i32) {
    %c0_i32 = arith.constant 0 : i32
    %c0_i32_0 = arith.constant 0 : i32
    %c0_i32_1 = arith.constant 0 : i32
    return %c0_i32, %c0_i32_0 : i32, i32
  }
  func.func @transform_5(%arg0: i32) -> (i32, i32) {
    %c0_i32 = arith.constant 0 : i32
    %c0_i32_0 = arith.constant 0 : i32
    return %arg0, %c0_i32 : i32, i32
  }
}

module attributes {stable_mosaic.version = 11 : i64} {
  func.func @kernel(%arg0: i32, %arg1: memref<16x64xf32, #tpu.memory_space<vmem>>, %arg2: memref<64x128xbf16, #tpu.memory_space<vmem>>, %arg3: memref<1x128xf32, #tpu.memory_space<vmem>>, %arg4: memref<128x128xbf16, #tpu.memory_space<vmem>>, %arg5: memref<1x128xf32, #tpu.memory_space<vmem>>, %arg6: memref<16x128xf32, #tpu.memory_space<vmem>>) attributes {dimension_semantics = [#tpu.dimension_semantics<parallel>], iteration_bounds = array<i64: 1>, scalar_prefetch = 0 : i64, scratch_operands = 0 : i64, tpu.core_type = #tpu.core_type<tc>, window_params = [{transform_indices = @transform_0, window_bounds = array<i64: 16, 64>}, {pipeline_mode = #tpu.pipeline_mode<synchronous>, transform_indices = @transform_1, window_bounds = array<i64: 64, 128>}, {pipeline_mode = #tpu.pipeline_mode<synchronous>, transform_indices = @transform_2, window_bounds = array<i64: 1, 128>}, {pipeline_mode = #tpu.pipeline_mode<synchronous>, transform_indices = @transform_3, window_bounds = array<i64: 128, 128>}, {pipeline_mode = #tpu.pipeline_mode<synchronous>, transform_indices = @transform_4, window_bounds = array<i64: 1, 128>}, {transform_indices = @transform_5, window_bounds = array<i64: 16, 128>}]} {
    %c0 = arith.constant 0 : index
    %c0_0 = arith.constant 0 : index
    %0 = vector.load %arg1[%c0, %c0_0] : memref<16x64xf32, #tpu.memory_space<vmem>>, vector<16x64xf32>
    %1 = arith.truncf %0 : vector<16x64xf32> to vector<16x64xbf16>
    %c0_1 = arith.constant 0 : index
    %c0_2 = arith.constant 0 : index
    %2 = vector.load %arg2[%c0_1, %c0_2] : memref<64x128xbf16, #tpu.memory_space<vmem>>, vector<64x128xbf16>
    %cst = arith.constant dense<0.000000e+00> : vector<16x128xf32>
    %3 = tpu.matmul %1, %2, %cst {dimension_numbers = #tpu.dot_dimension_numbers<[1], [0], [0], [1], [0, 0, 1, 1], [], []>} : vector<16x64xbf16>, vector<64x128xbf16>, vector<16x128xf32> -> vector<16x128xf32>
    %c0_3 = arith.constant 0 : index
    %c0_4 = arith.constant 0 : index
    %4 = vector.load %arg3[%c0_3, %c0_4] : memref<1x128xf32, #tpu.memory_space<vmem>>, vector<1x128xf32>
    %5 = vector.broadcast %4 : vector<1x128xf32> to vector<16x128xf32>
    %6 = arith.addf %3, %5 : vector<16x128xf32>
    %cst_5 = arith.constant 0.000000e+00 : f32
    %7 = vector.broadcast %cst_5 : f32 to vector<16x128xf32>
    %8 = arith.maximumf %6, %7 : vector<16x128xf32>
    %9 = arith.truncf %8 : vector<16x128xf32> to vector<16x128xbf16>
    %c0_6 = arith.constant 0 : index
    %c0_7 = arith.constant 0 : index
    %10 = vector.load %arg4[%c0_6, %c0_7] : memref<128x128xbf16, #tpu.memory_space<vmem>>, vector<128x128xbf16>
    %cst_8 = arith.constant dense<0.000000e+00> : vector<16x128xf32>
    %11 = tpu.matmul %9, %10, %cst_8 {dimension_numbers = #tpu.dot_dimension_numbers<[1], [0], [0], [1], [0, 0, 1, 1], [], []>} : vector<16x128xbf16>, vector<128x128xbf16>, vector<16x128xf32> -> vector<16x128xf32>
    %c0_9 = arith.constant 0 : index
    %c0_10 = arith.constant 0 : index
    %12 = vector.load %arg5[%c0_9, %c0_10] : memref<1x128xf32, #tpu.memory_space<vmem>>, vector<1x128xf32>
    %13 = vector.broadcast %12 : vector<1x128xf32> to vector<16x128xf32>
    %14 = arith.addf %11, %13 : vector<16x128xf32>
    %cst_11 = arith.constant dense<0xFF800000> : vector<16xf32>
    %15 = vector.multi_reduction <maximumf>, %14, %cst_11 [1] : vector<16x128xf32> to vector<16xf32>
    %16 = vector.shape_cast %15 : vector<16xf32> to vector<16x1xf32>
    %17 = vector.broadcast %16 : vector<16x1xf32> to vector<16x128xf32>
    %18 = arith.subf %14, %17 : vector<16x128xf32>
    %19 = math.exp %18 : vector<16x128xf32>
    %cst_12 = arith.constant dense<0.000000e+00> : vector<16xf32>
    %20 = vector.multi_reduction <add>, %19, %cst_12 [1] : vector<16x128xf32> to vector<16xf32>
    %21 = vector.shape_cast %20 : vector<16xf32> to vector<16x1xf32>
    %22 = math.log %21 : vector<16x1xf32>
    %23 = vector.broadcast %22 : vector<16x1xf32> to vector<16x128xf32>
    %24 = arith.subf %18, %23 : vector<16x128xf32>
    %c0_13 = arith.constant 0 : index
    %c0_14 = arith.constant 0 : index
    %25 = vector.load %arg6[%c0_13, %c0_14] : memref<16x128xf32, #tpu.memory_space<vmem>>, vector<16x128xf32>
    tpu.vector_store %arg6[%c0_13, %c0_14], %24 {strides = array<i32>} : memref<16x128xf32, #tpu.memory_space<vmem>>, vector<16x128xf32>,
    return
  }
  func.func @transform_0(%arg0: i32) -> (i32, i32) {
    %c0_i32 = arith.constant 0 : i32
    %c0_i32_0 = arith.constant 0 : i32
    return %arg0, %c0_i32 : i32, i32
  }
  func.func @transform_1(%arg0: i32) -> (i32, i32) {
    %c0_i32 = arith.constant 0 : i32
    %c0_i32_0 = arith.constant 0 : i32
    %c0_i32_1 = arith.constant 0 : i32
    return %c0_i32, %c0_i32_0 : i32, i32
  }
  func.func @transform_2(%arg0: i32) -> (i32, i32) {
    %c0_i32 = arith.constant 0 : i32
    %c0_i32_0 = arith.constant 0 : i32
    %c0_i32_1 = arith.constant 0 : i32
    return %c0_i32, %c0_i32_0 : i32, i32
  }
  func.func @transform_3(%arg0: i32) -> (i32, i32) {
    %c0_i32 = arith.constant 0 : i32
    %c0_i32_0 = arith.constant 0 : i32
    %c0_i32_1 = arith.constant 0 : i32
    return %c0_i32, %c0_i32_0 : i32, i32
  }
  func.func @transform_4(%arg0: i32) -> (i32, i32) {
    %c0_i32 = arith.constant 0 : i32
    %c0_i32_0 = arith.constant 0 : i32
    %c0_i32_1 = arith.constant 0 : i32
    return %c0_i32, %c0_i32_0 : i32, i32
  }
  func.func @transform_5(%arg0: i32) -> (i32, i32) {
    %c0_i32 = arith.constant 0 : i32
    %c0_i32_0 = arith.constant 0 : i32
    return %arg0, %c0_i32 : i32, i32
  }
}

</mosaic_0001>

<bundles_post_ra>
// kernel: tpu_custom_call.1
= control target key start
LH: loop header
LB: loop body
LE: loop exit
PB: predicated region body
PF: predicated region fallthrough
CT: control target
= control target key end

     0   :  { %10 = vsyncpa [#allocation3], 0  ;;  %s546_s0 = inlined_call_operand.hbm [shape: f32[16,64], index: 0, kind: input, shape index: {}]   ;;  %s547_s1 = inlined_call_operand.hbm [shape: bf16[64,128], index: 1, kind: input, shape index: {}]   ;;  %s548_s2 = inlined_call_operand.vmem [shape: f32[1,128], index: 2, kind: input, shape index: {}]   ;;  %s549_s3 = inlined_call_operand.hbm [shape: bf16[128,128], index: 3, kind: input, shape index: {}]   ;;  %s550_s4 = inlined_call_operand.vmem [shape: f32[1,128], index: 4, kind: input, shape index: {}]   ;;  %s551_s5 = inlined_call_operand.hbm [shape: f32[16,128], index: 5, kind: output, shape index: {}]  }
   0x1   :  { %11 = vsyncpa [#allocation6], 0 }
   0x2   :  { %12 = vsyncpa [#allocation4], 0  ;;  %s482_s18 = smov [#allocation5]  }
   0x3   :  { %s30_s19 = sshll.u32 %s482_s18, 4  ;;  %s31_s19 = int_to_ptr.vmem [resolvable:$true] %s30_s19 }
   0x4   :  { %s404_s20 = scalar_lea.vmem %s31_s19, 512  ;;  %p409_p1 = scmp.lt.s32.totalorder %s31_s19, %s31_s19 }
   0x5   :  { %p405_p0 = scmp.ne.s32.totalorder %s31_s19, %s404_s20  ;;  %p410_p2 = scmp.lt.s32.totalorder %s404_s20, %s404_s20 }
   0x7   :  { %p411_p3 = por %p410_p2, %p409_p1 }
   0x9   :  { %p412_p4 = pnand %p411_p3, %p405_p0 }
   0xb   :  { %415 = shalt.err (!%p412_p4)
}
   0xc   :  { %s483_s21 = smov 64   ;;  %s484_s22 = smov 4  }
   0xd   :  { %36 = dma.hbm_to_vmem [thread:$0]  %s547_s1, 512, %s31_s19, [#allocation6], %s483_s21, %s483_s21, %s484_s22  }
   0xe   :  { %s485_s25 = smov [#allocation2]  }
   0xf   :  { %s18_s26 = sshll.u32 %s485_s25, 4  ;;  %s19_s26 = int_to_ptr.vmem [resolvable:$true] %s18_s26 }
  0x10   :  { %s424_s27 = scalar_lea.vmem %s19_s26, 256  ;;  %p429_p6 = scmp.lt.s32.totalorder %s19_s26, %s19_s26 }
  0x11   :  { %p425_p5 = scmp.ne.s32.totalorder %s19_s26, %s424_s27  ;;  %p430_p7 = scmp.lt.s32.totalorder %s424_s27, %s424_s27 }
  0x13   :  { %p431_p8 = por %p430_p7, %p429_p6 }
  0x15   :  { %p432_p9 = pnand %p431_p8, %p425_p5 }
  0x17   :  { %435 = shalt.err (!%p432_p9)
}
  0x18   :  { %s486_s28 = smov 128   ;;  %s487_s29 = smov 8  }
  0x19   :  { %24 = dma.hbm_to_vmem [thread:$0]  %s546_s0, 256, %s19_s26, [#allocation3], %s486_s28, %s486_s28, %s487_s29  }
  0x1a   :  { %s488_s1 = smov [#allocation7]  }
  0x1b   :  { %s44_s7 = sshll.u32 %s488_s1, 4  ;;  %s45_s7 = int_to_ptr.vmem [resolvable:$true] %s44_s7 }
  0x1c   :  { %s444_s8 = scalar_lea.vmem %s45_s7, 1024  ;;  %p449_p11 = scmp.lt.s32.totalorder %s45_s7, %s45_s7 }
  0x1d   :  { %p445_p10 = scmp.ne.s32.totalorder %s45_s7, %s444_s8  ;;  %p450_p12 = scmp.lt.s32.totalorder %s444_s8, %s444_s8 }
  0x1f   :  { %p451_p13 = por %p450_p12, %p449_p11 }
  0x21   :  { %p452_p0 = pnand %p451_p13, %p445_p10 }
  0x23   :  { %455 = shalt.err (!%p452_p0)
}
  0x24   :  { %50 = dma.hbm_to_vmem [thread:$0]  %s549_s3, 1024, %s45_s7, [#allocation6], %s483_s21, %s483_s21, %s484_s22  }
  0x25   :  { %476 = dma.done.wait [#allocation3], 256  }
  0x26   :  { %477 = vsyncadd [#allocation3], 4294967040 }
  0x27   :  { %478 = dma.done.wait [#allocation6], 1536  }
  0x28   :  { %479 = vsyncadd [#allocation6], 4294965760  ;;  %v489_v0 = vmov 0.0   ;;  %vm490_vm0 = vmmov 0   ;;  %v376_v1 = vld [vmem:[#allocation5 + $0x18] sm:$0xff]   ;;  %v377_v2 = vld [vmem:[#allocation5 + $0x10] sm:$0xff]  }
  0x29   :  { %334 = vmatprep.subr.bf16.mxu0 %v489_v0  ;;  %342 = vmatprep.mubr.msk.bf16.mxu0 %vm490_vm0, %v489_v0  ;;  %v380_v3 = vld [vmem:[#allocation7 + $0x38] sm:$0xff]   ;;  %v378_v4 = vld [vmem:[#allocation5 + $0x8] sm:$0xff]   ;;  %v381_v5 = vld [vmem:[#allocation7 + $0x30] sm:$0xff]   ;;  %vm105_vm1 = vcmask 523264  }
  0x2a   :  { %346 = vmatprep.subr.bf16.mxu1 %v489_v0  ;;  %362 = vmatprep.mubr.msk.bf16.mxu1 %vm490_vm0, %v489_v0  ;;  %v379_v6 = vld [vmem:[#allocation5] sm:$0xff]   ;;  %v63_v7 = vld [vmem:[#allocation2] sm:$0xff]  ;;  %v64_v8 = vld [vmem:[#allocation2 + $0x8] sm:$0xff] }
  0x2b   :  { %335 = vmatpush3.bf16.msra.mxu0 %v376_v1  ;;  %347 = vmatpush3.bf16.msra.mxu1 %v380_v3  ;;  %v382_v9 = vld [vmem:[#allocation7 + $0x28] sm:$0xff]   ;;  %v65_v10 = vpack.c.bf16 %v64_v8, %v63_v7  ;;  %v383_v11 = vld [vmem:[#allocation7 + $0x20] sm:$0xff]   ;;  %v384_v12 = vld [vmem:[#allocation7 + $0x18] sm:$0xff]  }
  0x2c   :  { %336 = vmatprep.subr.bf16.mxu0 %v489_v0  ;;  %348 = vmatprep.subr.bf16.mxu1 %v489_v0  ;;  %v385_v13 = vld [vmem:[#allocation7 + $0x10] sm:$0xff]   ;;  %v386_v14 = vld [vmem:[#allocation7 + $0x8] sm:$0xff]   ;;  %v387_v15 = vld [vmem:[#allocation7] sm:$0xff]  }
  0x2d   :  { %v305_v16 = vld [vmem:[%s548_s2] ss:$0 sm:$0xff]  ;;  %s491_s2 = smov [#allocation8]  }
  0x2e   :  { %v311_v26 = vld [vmem:[%s550_s4] ss:$0 sm:$0xff]  ;;  %s292_s4 = sshll.u32 %s491_s2, 4  ;;  %s293_s4 = int_to_ptr.vmem [resolvable:$true] %s292_s4 }
  0x2f   :  { %337 = vmatpush3.bf16.msra.mxu0 %v377_v2  ;;  %349 = vmatpush3.bf16.msra.mxu1 %v381_v5  ;;  %s456_s13 = scalar_lea.vmem %s293_s4, 256  ;;  %p461_p2 = scmp.lt.s32.totalorder %s293_s4, %s293_s4 }
  0x30   :  { %338 = vmatprep.subr.bf16.mxu0 %v489_v0  ;;  %350 = vmatprep.subr.bf16.mxu1 %v489_v0  ;;  %p457_p1 = scmp.ne.s32.totalorder %s293_s4, %s456_s13  ;;  %p462_p3 = scmp.lt.s32.totalorder %s456_s13, %s456_s13 }
  0x32   :  { %p463_p4 = por %p462_p3, %p461_p2 }
  0x33   :  { %339 = vmatpush3.bf16.msra.mxu0 %v378_v4  ;;  %351 = vmatpush3.bf16.msra.mxu1 %v382_v9 }
  0x34   :  { %340 = vmatprep.subr.bf16.mxu0 %v489_v0  ;;  %352 = vmatprep.subr.bf16.mxu1 %v489_v0  ;;  %p464_p5 = pnand %p463_p4, %p457_p1 }
  0x37   :  { %341 = vmatpush3.bf16.msra.mxu0 %v379_v6  ;;  %353 = vmatpush3.bf16.msra.mxu1 %v383_v11 }
  0x38   :  { %354 = vmatprep.subr.bf16.mxu1 %v489_v0 }
  0x3a   :  { %343 = vmatmul.mubr.msk.bf16.vlgmr.msra.gmra.mxu0 %vm105_vm1, %v65_v10 }
  0x3b   :  { %355 = vmatpush3.bf16.msra.mxu1 %v384_v12 }
  0x3c   :  { %356 = vmatprep.subr.bf16.mxu1 %v489_v0 }
  0x3f   :  { %357 = vmatpush3.bf16.msra.mxu1 %v385_v13 }
  0x40   :  { %358 = vmatprep.subr.bf16.mxu1 %v489_v0 }
  0x43   :  { %359 = vmatpush3.bf16.msra.mxu1 %v386_v14 }
  0x44   :  { %360 = vmatprep.subr.bf16.mxu1 %v489_v0 }
  0x47   :  { %361 = vmatpush3.bf16.msra.mxu1 %v387_v15 }
  0xfa   :  { %v143_v17 = vpop.f32.mrf.mxu0 }
  0xfb   :  { %v144_v19 = vadd.f32 %v305_v16, %v143_v17 }
  0xfc   :  { %v344_v18 = vpop.f32.mrf.mxu0 }
  0xfd   :  { %v150_v23 = vmax.f32 %v144_v19, 0.0 }
  0xfe   :  { %v146_v20 = vpop.f32.mrf.mxu0 }
  0xff   :  { %v147_v21 = vadd.f32 %v305_v16, %v146_v20 }
 0x100   :  { %v345_v22 = vpop.f32.mrf.mxu0 }
 0x101   :  { %v151_v24 = vmax.f32 %v147_v21, 0.0 }
 0x103   :  { %v152_v25 = vpack.c.bf16 %v151_v24, %v150_v23 }
 0x105   :  { %363 = vmatmul.mubr.bf16.vlgmr.msra.gmra.mxu1 %v152_v25 }
 0x1c5   :  { %v258_v27 = vpop.f32.mrf.mxu1 }
 0x1c6   :  { %v259_v28 = vadd.f32 %v311_v26, %v258_v27 }
 0x1c7   :  { %v364_v29 = vpop.f32.mrf.mxu1 }
 0x1c8   :  { %265 = vmax.xlane.f32.xlu0 %v259_v28 }
 0x1c9   :  { %v261_v30 = vpop.f32.mrf.mxu1 }
 0x1ca   :  { %v262_v31 = vadd.f32 %v311_v26, %v261_v30 }
 0x1cb   :  { %v365_v32 = vpop.f32.mrf.mxu1 }
 0x1cc   :  { %267 = vmax.xlane.f32.xlu0 %v262_v31 }
 0x251   :  { %v266_v33 = vpop.xlane.xlu0 %265 }
 0x252   :  { %v269_v34 = vsub.f32 %v259_v28, %v266_v33 }
 0x254   :  { %v271_v35 = vmul.f32 1.442695, %v269_v34 }
 0x255   :  { %v268_v36 = vpop.xlane.xlu0 %267 }
 0x256   :  { %v270_v37 = vsub.f32 %v262_v31, %v268_v36  ;;  %388 = vpow2.f32 %v271_v35 }
 0x258   :  { %v273_v38 = vmul.f32 1.442695, %v270_v37 }
 0x25a   :  { %390 = vpow2.f32 %v273_v38 }
 0x263   :  { %v389_v39 = vpop.eup %388 }
 0x264   :  { %275 = vadd.xlane.f32.xlu1 %v389_v39 }
 0x267   :  { %v391_v40 = vpop.eup %390 }
 0x268   :  { %277 = vadd.xlane.f32.xlu1 %v391_v40 }
 0x2ed   :  { %v276_v41 = vpop.xlane.xlu1 %275 }
 0x2ee   :  { %392 = vlog2.f32 %v276_v41 }
 0x2f1   :  { %v278_v42 = vpop.xlane.xlu1 %277 }
 0x2f2   :  { %394 = vlog2.f32 %v278_v42 }
 0x2fb   :  { %v393_v43 = vpop.eup %392 }
 0x2fc   :  { %v280_v44 = vmul.f32 0.6931472, %v393_v43 }
 0x2fe   :  { %v283_v45 = vsub.f32 %v269_v34, %v280_v44 }
 0x2ff   :  { %v395_v46 = vpop.eup %394 }
 0x300   :  { %v282_v47 = vmul.f32 0.6931472, %v395_v46  ;;  %285 = vst [vmem:[#allocation8] sm:$0xff] %v283_v45 }
 0x302   :  { %v284_v48 = vsub.f32 %v270_v37, %v282_v47 }
 0x304   :  { %286 = vst [vmem:[#allocation8 + $0x8] sm:$0xff] %v284_v48 }
 0x305   :  { %467 = shalt.err (!%p464_p5)
}
 0x306   :  { %298 = dma.vmem_to_hbm [thread:$0]  %s293_s4, 256, %s551_s5, [#allocation4], %s486_s28, %s486_s28, %s487_s29  }
 0x307   :  { %480 = dma.done.wait [#allocation4], 256  }
 0x308   :  { %481 = vsyncadd [#allocation4], 4294967040 }
 0x309   :  { %302 = vsyncpa [#allocation3], 1 }
 0x30a   :  { %303 = vsyncpa [#allocation6], 1 }
 0x30b   :  { %304 = vsyncpa [#allocation4], 1 }

// kernel: tpu_custom_call.1
= control target key start
LH: loop header
LB: loop body
LE: loop exit
PB: predicated region body
PF: predicated region fallthrough
CT: control target
= control target key end

     0   :  { %10 = vsyncpa [#allocation3], 0  ;;  %s546_s0 = inlined_call_operand.hbm [shape: f32[16,64], index: 0, kind: input, shape index: {}]   ;;  %s547_s1 = inlined_call_operand.hbm [shape: bf16[64,128], index: 1, kind: input, shape index: {}]   ;;  %s548_s2 = inlined_call_operand.vmem [shape: f32[1,128], index: 2, kind: input, shape index: {}]   ;;  %s549_s3 = inlined_call_operand.hbm [shape: bf16[128,128], index: 3, kind: input, shape index: {}]   ;;  %s550_s4 = inlined_call_operand.vmem [shape: f32[1,128], index: 4, kind: input, shape index: {}]   ;;  %s551_s5 = inlined_call_operand.hbm [shape: f32[16,128], index: 5, kind: output, shape index: {}]  }
   0x1   :  { %11 = vsyncpa [#allocation6], 0 }
   0x2   :  { %12 = vsyncpa [#allocation4], 0  ;;  %s482_s18 = smov [#allocation5]  }
   0x3   :  { %s30_s19 = sshll.u32 %s482_s18, 4  ;;  %s31_s19 = int_to_ptr.vmem [resolvable:$true] %s30_s19 }
   0x4   :  { %s404_s20 = scalar_lea.vmem %s31_s19, 512  ;;  %p409_p1 = scmp.lt.s32.totalorder %s31_s19, %s31_s19 }
   0x5   :  { %p405_p0 = scmp.ne.s32.totalorder %s31_s19, %s404_s20  ;;  %p410_p2 = scmp.lt.s32.totalorder %s404_s20, %s404_s20 }
   0x7   :  { %p411_p3 = por %p410_p2, %p409_p1 }
   0x9   :  { %p412_p4 = pnand %p411_p3, %p405_p0 }
   0xb   :  { %415 = shalt.err (!%p412_p4)
}
   0xc   :  { %s483_s21 = smov 64   ;;  %s484_s22 = smov 4  }
   0xd   :  { %36 = dma.hbm_to_vmem [thread:$0]  %s547_s1, 512, %s31_s19, [#allocation6], %s483_s21, %s483_s21, %s484_s22  }
   0xe   :  { %s485_s25 = smov [#allocation2]  }
   0xf   :  { %s18_s26 = sshll.u32 %s485_s25, 4  ;;  %s19_s26 = int_to_ptr.vmem [resolvable:$true] %s18_s26 }
  0x10   :  { %s424_s27 = scalar_lea.vmem %s19_s26, 256  ;;  %p429_p6 = scmp.lt.s32.totalorder %s19_s26, %s19_s26 }
  0x11   :  { %p425_p5 = scmp.ne.s32.totalorder %s19_s26, %s424_s27  ;;  %p430_p7 = scmp.lt.s32.totalorder %s424_s27, %s424_s27 }
  0x13   :  { %p431_p8 = por %p430_p7, %p429_p6 }
  0x15   :  { %p432_p9 = pnand %p431_p8, %p425_p5 }
  0x17   :  { %435 = shalt.err (!%p432_p9)
}
  0x18   :  { %s486_s28 = smov 128   ;;  %s487_s29 = smov 8  }
  0x19   :  { %24 = dma.hbm_to_vmem [thread:$0]  %s546_s0, 256, %s19_s26, [#allocation3], %s486_s28, %s486_s28, %s487_s29  }
  0x1a   :  { %s488_s1 = smov [#allocation7]  }
  0x1b   :  { %s44_s7 = sshll.u32 %s488_s1, 4  ;;  %s45_s7 = int_to_ptr.vmem [resolvable:$true] %s44_s7 }
  0x1c   :  { %s444_s8 = scalar_lea.vmem %s45_s7, 1024  ;;  %p449_p11 = scmp.lt.s32.totalorder %s45_s7, %s45_s7 }
  0x1d   :  { %p445_p10 = scmp.ne.s32.totalorder %s45_s7, %s444_s8  ;;  %p450_p12 = scmp.lt.s32.totalorder %s444_s8, %s444_s8 }
  0x1f   :  { %p451_p13 = por %p450_p12, %p449_p11 }
  0x21   :  { %p452_p0 = pnand %p451_p13, %p445_p10 }
  0x23   :  { %455 = shalt.err (!%p452_p0)
}
  0x24   :  { %50 = dma.hbm_to_vmem [thread:$0]  %s549_s3, 1024, %s45_s7, [#allocation6], %s483_s21, %s483_s21, %s484_s22  }
  0x25   :  { %476 = dma.done.wait [#allocation3], 256  }
  0x26   :  { %477 = vsyncadd [#allocation3], 4294967040 }
  0x27   :  { %478 = dma.done.wait [#allocation6], 1536  }
  0x28   :  { %479 = vsyncadd [#allocation6], 4294965760  ;;  %v489_v0 = vmov 0.0   ;;  %vm490_vm0 = vmmov 0   ;;  %v376_v1 = vld [vmem:[#allocation5 + $0x18] sm:$0xff]   ;;  %v377_v2 = vld [vmem:[#allocation5 + $0x10] sm:$0xff]  }
  0x29   :  { %334 = vmatprep.subr.bf16.mxu0 %v489_v0  ;;  %342 = vmatprep.mubr.msk.bf16.mxu0 %vm490_vm0, %v489_v0  ;;  %v380_v3 = vld [vmem:[#allocation7 + $0x38] sm:$0xff]   ;;  %v378_v4 = vld [vmem:[#allocation5 + $0x8] sm:$0xff]   ;;  %v381_v5 = vld [vmem:[#allocation7 + $0x30] sm:$0xff]   ;;  %vm105_vm1 = vcmask 523264  }
  0x2a   :  { %346 = vmatprep.subr.bf16.mxu1 %v489_v0  ;;  %362 = vmatprep.mubr.msk.bf16.mxu1 %vm490_vm0, %v489_v0  ;;  %v379_v6 = vld [vmem:[#allocation5] sm:$0xff]   ;;  %v63_v7 = vld [vmem:[#allocation2] sm:$0xff]  ;;  %v64_v8 = vld [vmem:[#allocation2 + $0x8] sm:$0xff] }
  0x2b   :  { %335 = vmatpush3.bf16.msra.mxu0 %v376_v1  ;;  %347 = vmatpush3.bf16.msra.mxu1 %v380_v3  ;;  %v382_v9 = vld [vmem:[#allocation7 + $0x28] sm:$0xff]   ;;  %v65_v10 = vpack.c.bf16 %v64_v8, %v63_v7  ;;  %v383_v11 = vld [vmem:[#allocation7 + $0x20] sm:$0xff]   ;;  %v384_v12 = vld [vmem:[#allocation7 + $0x18] sm:$0xff]  }
  0x2c   :  { %336 = vmatprep.subr.bf16.mxu0 %v489_v0  ;;  %348 = vmatprep.subr.bf16.mxu1 %v489_v0  ;;  %v385_v13 = vld [vmem:[#allocation7 + $0x10] sm:$0xff]   ;;  %v386_v14 = vld [vmem:[#allocation7 + $0x8] sm:$0xff]   ;;  %v387_v15 = vld [vmem:[#allocation7] sm:$0xff]  }
  0x2d   :  { %v305_v16 = vld [vmem:[%s548_s2] ss:$0 sm:$0xff]  ;;  %s491_s2 = smov [#allocation8]  }
  0x2e   :  { %v311_v26 = vld [vmem:[%s550_s4] ss:$0 sm:$0xff]  ;;  %s292_s4 = sshll.u32 %s491_s2, 4  ;;  %s293_s4 = int_to_ptr.vmem [resolvable:$true] %s292_s4 }
  0x2f   :  { %337 = vmatpush3.bf16.msra.mxu0 %v377_v2  ;;  %349 = vmatpush3.bf16.msra.mxu1 %v381_v5  ;;  %s456_s13 = scalar_lea.vmem %s293_s4, 256  ;;  %p461_p2 = scmp.lt.s32.totalorder %s293_s4, %s293_s4 }
  0x30   :  { %338 = vmatprep.subr.bf16.mxu0 %v489_v0  ;;  %350 = vmatprep.subr.bf16.mxu1 %v489_v0  ;;  %p457_p1 = scmp.ne.s32.totalorder %s293_s4, %s456_s13  ;;  %p462_p3 = scmp.lt.s32.totalorder %s456_s13, %s456_s13 }
  0x32   :  { %p463_p4 = por %p462_p3, %p461_p2 }
  0x33   :  { %339 = vmatpush3.bf16.msra.mxu0 %v378_v4  ;;  %351 = vmatpush3.bf16.msra.mxu1 %v382_v9 }
  0x34   :  { %340 = vmatprep.subr.bf16.mxu0 %v489_v0  ;;  %352 = vmatprep.subr.bf16.mxu1 %v489_v0  ;;  %p464_p5 = pnand %p463_p4, %p457_p1 }
  0x37   :  { %341 = vmatpush3.bf16.msra.mxu0 %v379_v6  ;;  %353 = vmatpush3.bf16.msra.mxu1 %v383_v11 }
  0x38   :  { %354 = vmatprep.subr.bf16.mxu1 %v489_v0 }
  0x3a   :  { %343 = vmatmul.mubr.msk.bf16.vlgmr.msra.gmra.mxu0 %vm105_vm1, %v65_v10 }
  0x3b   :  { %355 = vmatpush3.bf16.msra.mxu1 %v384_v12 }
  0x3c   :  { %356 = vmatprep.subr.bf16.mxu1 %v489_v0 }
  0x3f   :  { %357 = vmatpush3.bf16.msra.mxu1 %v385_v13 }
  0x40   :  { %358 = vmatprep.subr.bf16.mxu1 %v489_v0 }
  0x43   :  { %359 = vmatpush3.bf16.msra.mxu1 %v386_v14 }
  0x44   :  { %360 = vmatprep.subr.bf16.mxu1 %v489_v0 }
  0x47   :  { %361 = vmatpush3.bf16.msra.mxu1 %v387_v15 }
  0xfa   :  { %v143_v17 = vpop.f32.mrf.mxu0 }
  0xfb   :  { %v144_v19 = vadd.f32 %v305_v16, %v143_v17 }
  0xfc   :  { %v344_v18 = vpop.f32.mrf.mxu0 }
  0xfd   :  { %v150_v23 = vmax.f32 %v144_v19, 0.0 }
  0xfe   :  { %v146_v20 = vpop.f32.mrf.mxu0 }
  0xff   :  { %v147_v21 = vadd.f32 %v305_v16, %v146_v20 }
 0x100   :  { %v345_v22 = vpop.f32.mrf.mxu0 }
 0x101   :  { %v151_v24 = vmax.f32 %v147_v21, 0.0 }
 0x103   :  { %v152_v25 = vpack.c.bf16 %v151_v24, %v150_v23 }
 0x105   :  { %363 = vmatmul.mubr.bf16.vlgmr.msra.gmra.mxu1 %v152_v25 }
 0x1c5   :  { %v258_v27 = vpop.f32.mrf.mxu1 }
 0x1c6   :  { %v259_v28 = vadd.f32 %v311_v26, %v258_v27 }
 0x1c7   :  { %v364_v29 = vpop.f32.mrf.mxu1 }
 0x1c8   :  { %265 = vmax.xlane.f32.xlu0 %v259_v28 }
 0x1c9   :  { %v261_v30 = vpop.f32.mrf.mxu1 }
 0x1ca   :  { %v262_v31 = vadd.f32 %v311_v26, %v261_v30 }
 0x1cb   :  { %v365_v32 = vpop.f32.mrf.mxu1 }
 0x1cc   :  { %267 = vmax.xlane.f32.xlu0 %v262_v31 }
 0x251   :  { %v266_v33 = vpop.xlane.xlu0 %265 }
 0x252   :  { %v269_v34 = vsub.f32 %v259_v28, %v266_v33 }
 0x254   :  { %v271_v35 = vmul.f32 1.442695, %v269_v34 }
 0x255   :  { %v268_v36 = vpop.xlane.xlu0 %267 }
 0x256   :  { %v270_v37 = vsub.f32 %v262_v31, %v268_v36  ;;  %388 = vpow2.f32 %v271_v35 }
 0x258   :  { %v273_v38 = vmul.f32 1.442695, %v270_v37 }
 0x25a   :  { %390 = vpow2.f32 %v273_v38 }
 0x263   :  { %v389_v39 = vpop.eup %388 }
 0x264   :  { %275 = vadd.xlane.f32.xlu1 %v389_v39 }
 0x267   :  { %v391_v40 = vpop.eup %390 }
 0x268   :  { %277 = vadd.xlane.f32.xlu1 %v391_v40 }
 0x2ed   :  { %v276_v41 = vpop.xlane.xlu1 %275 }
 0x2ee   :  { %392 = vlog2.f32 %v276_v41 }
 0x2f1   :  { %v278_v42 = vpop.xlane.xlu1 %277 }
 0x2f2   :  { %394 = vlog2.f32 %v278_v42 }
 0x2fb   :  { %v393_v43 = vpop.eup %392 }
 0x2fc   :  { %v280_v44 = vmul.f32 0.6931472, %v393_v43 }
 0x2fe   :  { %v283_v45 = vsub.f32 %v269_v34, %v280_v44 }
 0x2ff   :  { %v395_v46 = vpop.eup %394 }
 0x300   :  { %v282_v47 = vmul.f32 0.6931472, %v395_v46  ;;  %285 = vst [vmem:[#allocation8] sm:$0xff] %v283_v45 }
 0x302   :  { %v284_v48 = vsub.f32 %v270_v37, %v282_v47 }
 0x304   :  { %286 = vst [vmem:[#allocation8 + $0x8] sm:$0xff] %v284_v48 }
 0x305   :  { %467 = shalt.err (!%p464_p5)
}
 0x306   :  { %298 = dma.vmem_to_hbm [thread:$0]  %s293_s4, 256, %s551_s5, [#allocation4], %s486_s28, %s486_s28, %s487_s29  }
 0x307   :  { %480 = dma.done.wait [#allocation4], 256  }
 0x308   :  { %481 = vsyncadd [#allocation4], 4294967040 }
 0x309   :  { %302 = vsyncpa [#allocation3], 1 }
 0x30a   :  { %303 = vsyncpa [#allocation6], 1 }
 0x30b   :  { %304 = vsyncpa [#allocation4], 1 }

</bundles_post_ra>
